<compile_context>
chip_gen: v5e
topology: v5e:2x2
jax: 0.10.0
libtpu: 0.0.40
codegen_flags: <defaults>
</compile_context>

<pallas_src>
import functools

import jax
import jax.numpy as jnp
from jax import lax
from jax.experimental import pallas as pl
from jax.experimental.pallas import tpu as pltpu


def _round_up(x, m):
    return ((x + m - 1) // m) * m


def _fold_rows(x):
    """(TM, 128) -> (8, 128): sum groups of 8 sublanes (layout-preserving)."""
    tm = x.shape[0]
    if tm == 8:
        return x
    return jnp.sum(x.reshape(tm // 8, 8, 128), axis=0)


def _dice_sums_kernel(pred_ref, gt_ref, out_ref, *, num_classes, tile_rows,
                      tiles_per_split, hw, mask_tail):
    """Accumulate per-class (intersect, z_sum, y_sum) partial sums.

    pred_ref: (C, TM, 128)  logits (any float dtype; upcast to f32 here)
    gt_ref:   (TM, 128)     int labels
    out_ref:  (3*C, 8, 128) f32 accumulator (resident across the row-tile axis)
    """
    s = pl.program_id(1)
    n = pl.program_id(2)

    @pl.when(n == 0)
    def _():
        out_ref[...] = jnp.zeros_like(out_ref)

    g = gt_ref[...]                                        # (TM, 128) int32

    # Per-class logits as fully packed (TM, 128) f32 slabs; C unrolled.
    ps = [pred_ref[c].astype(jnp.float32) for c in range(num_classes)]

    # Softmax over the (Python-unrolled) class axis: pure elementwise VPU/EUP.
    m = ps[0]
    for c in range(1, num_classes):
        m = jnp.maximum(m, ps[c])
    es = [jnp.exp(ps[c] - m) for c in range(num_classes)]
    ssum = es[0]
    for c in range(1, num_classes):
        ssum = ssum + es[c]
    r = pl.reciprocal(ssum, approx=True)                   # EUP vrcp
    r = r * (2.0 - ssum * r)                               # one Newton step

    if mask_tail:
        # Logical (unclamped) row offset of this tile; lanes past H*W (lane
        # pad, row over-cover, or a clamped duplicate block) are masked out.
        row0 = (s * tiles_per_split + n) * tile_rows
        rows = row0 + lax.broadcasted_iota(jnp.int32, g.shape, 0)
        lanes = lax.broadcasted_iota(jnp.int32, g.shape, 1)
        valid = rows * 128 + lanes < hw
    else:
        valid = None

    zero = jnp.float32(0.0)
    one = jnp.float32(1.0)
    for c in range(num_classes):
        sm_c = es[c] * r                                    # softmax prob of class c
        match = g == c
        if valid is not None:
            match = jnp.logical_and(match, valid)
            z_c = jnp.where(valid, sm_c, zero)              # where(): OOB NaN never leaks
        else:
            z_c = sm_c
        i_c = jnp.where(match, sm_c, zero)
        y_c = jnp.where(match, one, zero)
        # Fold (TM,128) -> (8,128) then accumulate: ~1 vreg ld/add/st each.
        out_ref[3 * c + 0] += _fold_rows(i_c)
        out_ref[3 * c + 1] += _fold_rows(z_c)
        out_ref[3 * c + 2] += _fold_rows(y_c)


@functools.partial(jax.jit, static_argnames=("max_tile_rows", "num_spatial_splits"))
def dice_loss(pred, gt, max_tile_rows=512, num_spatial_splits=None):
    """pred: (B, C, H, W) float logits, gt: (B, 1, H, W) int labels -> scalar."""
    B, C, H, W = pred.shape
    HW = H * W
    R = pl.cdiv(HW, 128)                 # rows of 128 lanes

    # Spatial splits: keep both v7x TensorCores busy when B == 1.
    S = num_spatial_splits
    if S is None:
        S = 2 if B == 1 else 1
    S = max(1, min(S, pl.cdiv(R, 8)))    # never split below one 8-row tile

    max_tm = max(8, (max_tile_rows // 8) * 8)
    TM = min(max_tm, _round_up(pl.cdiv(R, S), 8))          # multiple of 8
    npt = pl.cdiv(pl.cdiv(R, TM), S)                       # row tiles / split
    mask_tail = (S * npt * TM * 128) != HW                 # any over-cover / lane pad?

    # Free reshapes of the NCHW tensors into lane-packed slabs.  A padded HBM
    # copy only happens when H*W is not a multiple of 128 (rare for images).
    pred3 = pred.reshape(B, C, HW)
    gt2 = gt.reshape(B, HW).astype(jnp.int32)
    lane_pad = R * 128 - HW
    if lane_pad:
        pred3 = jnp.pad(pred3, ((0, 0), (0, 0), (0, lane_pad)))
        gt2 = jnp.pad(gt2, ((0, 0), (0, lane_pad)))
    pred4 = pred3.reshape(B, C, R, 128)
    gt3 = gt2.reshape(B, R, 128)

    last_blk = pl.cdiv(R, TM) - 1

    def _blk(s, n):
        # Clamp so no grid step issues a fully out-of-bounds DMA; the lane
        # mask zeroes the (duplicate) contribution of any clamped step.
        return jnp.minimum(s * npt + n, last_blk)

    kernel = functools.partial(
        _dice_sums_kernel, num_classes=C, tile_rows=TM,
        tiles_per_split=npt, hw=HW, mask_tail=mask_tail)

    sums = pl.pallas_call(
        kernel,
        out_shape=jax.ShapeDtypeStruct((B, S, 3 * C, 8, 128), jnp.float32),
        grid=(B, S, npt),
        in_specs=[
            pl.BlockSpec((None, C, TM, 128),
                         lambda b, s, n: (b, 0, _blk(s, n), 0)),
            pl.BlockSpec((None, TM, 128),
                         lambda b, s, n: (b, _blk(s, n), 0)),
        ],
        out_specs=pl.BlockSpec((None, None, 3 * C, 8, 128),
                               lambda b, s, n: (b, s, 0, 0, 0)),
        compiler_params=pltpu.CompilerParams(
            dimension_semantics=("parallel", "parallel", "arbitrary")),
    )(pred4, gt3)

    # Final tiny reduce + scalar combine (matches the hardcoded smooth=1e-5).
    # NOTE: forward() hardcodes a 3-class label cat (bg/label1/label2); the
    # per-class unroll generalizes this and is identical for C == 3.
    tot = jnp.sum(sums, axis=(0, 1, 3, 4)).reshape(C, 3)   # [intersect, z, y]
    smooth = 1e-5
    terms = (2.0 * tot[:, 0] + smooth) / (tot[:, 1] + tot[:, 2] + smooth)
    return 1.0 - jnp.sum(terms) / C


def _dice_loss_ref(pred, gt):
    """Pure-JAX reference mirroring the PyTorch forward()."""
    B, C, H, W = pred.shape
    sm = jax.nn.softmax(pred.astype(jnp.float32), axis=1)
    g = gt.astype(jnp.int32)  # (B, 1, H, W)
    smooth = 1e-5
    loss = 0.0
    for i in range(C):
        label_i = (g[:, 0] == i).astype(jnp.float32)  # (B, H, W)
        intersect = jnp.sum(sm[:, i] * label_i)
        z_sum = jnp.sum(sm[:, i])
        y_sum = jnp.sum(label_i)
        loss += (2.0 * intersect + smooth) / (z_sum + y_sum + smooth)
    return 1.0 - loss / C


if __name__ == "__main__":
    key = jax.random.PRNGKey(0)
    kp, kg = jax.random.split(key)

    # forward() hardcodes 3 classes (bg, label1, label2).
    B, C, H, W = 2, 3, 16, 16
    pred = jax.random.normal(kp, (B, C, H, W), dtype=jnp.float32)
    gt = jax.random.randint(kg, (B, 1, H, W), 0, 3, dtype=jnp.int32)
    loss = dice_loss(pred, gt)
    jax.block_until_ready(loss)
    ref = _dice_loss_ref(pred, gt)
    assert jnp.allclose(loss, ref, atol=1e-4, rtol=1e-4), (loss, ref)

    # Ragged spatial size -> exercises lane padding + in-kernel tail masking.
    H2, W2 = 13, 11
    pred2 = jax.random.normal(kp, (B, C, H2, W2), dtype=jnp.float32)
    gt2 = jax.random.randint(kg, (B, 1, H2, W2), 0, 3, dtype=jnp.int32)
    loss2 = dice_loss(pred2, gt2)
    jax.block_until_ready(loss2)
    ref2 = _dice_loss_ref(pred2, gt2)
    assert jnp.allclose(loss2, ref2, atol=1e-4, rtol=1e-4), (loss2, ref2)

    # B == 1 -> auto spatial split (keeps both v7x TensorCores busy).
    H3, W3 = 64, 64
    pred3 = jax.random.normal(kp, (1, C, H3, W3), dtype=jnp.float32)
    gt3 = jax.random.randint(kg, (1, 1, H3, W3), 0, 3, dtype=jnp.int32)
    loss3 = dice_loss(pred3, gt3)
    jax.block_until_ready(loss3)
    ref3 = _dice_loss_ref(pred3, gt3)
    assert jnp.allclose(loss3, ref3, atol=1e-4, rtol=1e-4), (loss3, ref3)

    print("KERNEL_OK")
</pallas_src>

<mosaic_0001>
module attributes {stable_mosaic.version = 11 : i64} {
  func.func @_dice_sums_kernel(%arg0: i32, %arg1: i32, %arg2: i32, %arg3: memref<1x3x8x128xf32, #tpu.memory_space<vmem>>, %arg4: memref<1x8x128xi32, #tpu.memory_space<vmem>>, %arg5: memref<1x1x9x8x128xf32, #tpu.memory_space<vmem>>) attributes {dimension_semantics = [#tpu.dimension_semantics<parallel>, #tpu.dimension_semantics<parallel>, #tpu.dimension_semantics<arbitrary>], iteration_bounds = array<i64: 2, 1, 1>, scalar_prefetch = 0 : i64, scratch_operands = 0 : i64, tpu.core_type = #tpu.core_type<tc>, window_params = [{transform_indices = @transform_0, window_bounds = array<i64: 1, 3, 8, 128>}, {transform_indices = @transform_1, window_bounds = array<i64: 1, 8, 128>}, {transform_indices = @transform_2, window_bounds = array<i64: 1, 1, 9, 8, 128>}]} {
    %c0_i32 = arith.constant 0 : i32
    %0 = arith.cmpi eq, %arg2, %c0_i32 : i32
    %1 = arith.extui %0 : i1 to i32
    %c0_i32_0 = arith.constant 0 : i32
    %2 = arith.cmpi ne, %1, %c0_i32_0 : i32
    scf.if %2 {
      %cst_111 = arith.constant 0.000000e+00 : f32
      %125 = vector.broadcast %cst_111 : f32 to vector<9x8x128xf32>
      %c0_112 = arith.constant 0 : index
      %c0_113 = arith.constant 0 : index
      %c0_114 = arith.constant 0 : index
      %c0_115 = arith.constant 0 : index
      %c0_116 = arith.constant 0 : index
      %126 = vector.load %arg5[%c0_112, %c0_113, %c0_114, %c0_115, %c0_116] : memref<1x1x9x8x128xf32, #tpu.memory_space<vmem>>, vector<1x1x9x8x128xf32>
      %127 = vector.shape_cast %126 : vector<1x1x9x8x128xf32> to vector<9x8x128xf32>
      %128 = vector.shape_cast %125 : vector<9x8x128xf32> to vector<1x1x9x8x128xf32>
      tpu.vector_store %arg5[%c0_112, %c0_113, %c0_114, %c0_115, %c0_116], %128 {strides = array<i32>} : memref<1x1x9x8x128xf32, #tpu.memory_space<vmem>>, vector<1x1x9x8x128xf32>,
    } else {
    }
    %c0 = arith.constant 0 : index
    %c0_1 = arith.constant 0 : index
    %c0_2 = arith.constant 0 : index
    %3 = vector.load %arg4[%c0, %c0_1, %c0_2] : memref<1x8x128xi32, #tpu.memory_space<vmem>>, vector<1x8x128xi32>
    %4 = vector.shape_cast %3 : vector<1x8x128xi32> to vector<8x128xi32>
    %c0_3 = arith.constant 0 : index
    %c0_4 = arith.constant 0 : index
    %c0_5 = arith.constant 0 : index
    %c0_6 = arith.constant 0 : index
    %5 = vector.load %arg3[%c0_3, %c0_4, %c0_5, %c0_6] : memref<1x3x8x128xf32, #tpu.memory_space<vmem>>, vector<1x1x8x128xf32>
    %6 = vector.shape_cast %5 : vector<1x1x8x128xf32> to vector<8x128xf32>
    %c0_7 = arith.constant 0 : index
    %c1 = arith.constant 1 : index
    %c0_8 = arith.constant 0 : index
    %c0_9 = arith.constant 0 : index
    %7 = vector.load %arg3[%c0_7, %c1, %c0_8, %c0_9] : memref<1x3x8x128xf32, #tpu.memory_space<vmem>>, vector<1x1x8x128xf32>
    %8 = vector.shape_cast %7 : vector<1x1x8x128xf32> to vector<8x128xf32>
    %c0_10 = arith.constant 0 : index
    %c2 = arith.constant 2 : index
    %c0_11 = arith.constant 0 : index
    %c0_12 = arith.constant 0 : index
    %9 = vector.load %arg3[%c0_10, %c2, %c0_11, %c0_12] : memref<1x3x8x128xf32, #tpu.memory_space<vmem>>, vector<1x1x8x128xf32>
    %10 = vector.shape_cast %9 : vector<1x1x8x128xf32> to vector<8x128xf32>
    %11 = arith.maximumf %6, %8 : vector<8x128xf32>
    %12 = arith.maximumf %11, %10 : vector<8x128xf32>
    %13 = arith.subf %6, %12 : vector<8x128xf32>
    %14 = math.exp %13 : vector<8x128xf32>
    %15 = arith.subf %8, %12 : vector<8x128xf32>
    %16 = math.exp %15 : vector<8x128xf32>
    %17 = arith.subf %10, %12 : vector<8x128xf32>
    %18 = math.exp %17 : vector<8x128xf32>
    %19 = arith.addf %14, %16 : vector<8x128xf32>
    %20 = arith.addf %19, %18 : vector<8x128xf32>
    %21 = tpu.reciprocal %20 {approx = true} : vector<8x128xf32> -> vector<8x128xf32>
    %22 = arith.mulf %20, %21 : vector<8x128xf32>
    %cst = arith.constant 2.000000e+00 : f32
    %23 = vector.broadcast %cst : f32 to vector<8x128xf32>
    %24 = arith.subf %23, %22 : vector<8x128xf32>
    %25 = arith.mulf %21, %24 : vector<8x128xf32>
    %c1_i32 = arith.constant 1 : i32
    %26 = arith.muli %arg1, %c1_i32 : i32
    %27 = arith.addi %26, %arg2 : i32
    %c8_i32 = arith.constant 8 : i32
    %28 = arith.muli %27, %c8_i32 : i32
    %29 = tpu.iota {dimensions = array<i32: 0>} : vector<8x128xi32>
    %30 = vector.broadcast %28 : i32 to vector<8x128xi32>
    %31 = arith.addi %30, %29 : vector<8x128xi32>
    %32 = tpu.iota {dimensions = array<i32: 1>} : vector<8x128xi32>
    %c128_i32 = arith.constant 128 : i32
    %33 = vector.broadcast %c128_i32 : i32 to vector<8x128xi32>
    %34 = arith.muli %31, %33 : vector<8x128xi32>
    %35 = arith.addi %34, %32 : vector<8x128xi32>
    %c256_i32 = arith.constant 256 : i32
    %36 = vector.broadcast %c256_i32 : i32 to vector<8x128xi32>
    %37 = arith.cmpi slt, %35, %36 : vector<8x128xi32>
    %38 = arith.mulf %14, %25 : vector<8x128xf32>
    %c0_i32_13 = arith.constant 0 : i32
    %39 = vector.broadcast %c0_i32_13 : i32 to vector<8x128xi32>
    %40 = arith.cmpi eq, %4, %39 : vector<8x128xi32>
    %41 = arith.andi %40, %37 : vector<8x128xi1>
    %cst_14 = arith.constant 0.000000e+00 : f32
    %42 = vector.broadcast %cst_14 : f32 to vector<8x128xf32>
    %43 = arith.select %37, %38, %42 : vector<8x128xi1>, vector<8x128xf32>
    %cst_15 = arith.constant 0.000000e+00 : f32
    %44 = vector.broadcast %cst_15 : f32 to vector<8x128xf32>
    %45 = arith.select %41, %38, %44 : vector<8x128xi1>, vector<8x128xf32>
    %cst_16 = arith.constant 1.000000e+00 : f32
    %cst_17 = arith.constant 0.000000e+00 : f32
    %46 = vector.broadcast %cst_16 : f32 to vector<8x128xf32>
    %47 = vector.broadcast %cst_17 : f32 to vector<8x128xf32>
    %48 = arith.select %41, %46, %47 : vector<8x128xi1>, vector<8x128xf32>
    %c0_18 = arith.constant 0 : index
    %c0_19 = arith.constant 0 : index
    %c0_20 = arith.constant 0 : index
    %c0_21 = arith.constant 0 : index
    %c0_22 = arith.constant 0 : index
    %49 = vector.load %arg5[%c0_18, %c0_19, %c0_20, %c0_21, %c0_22] : memref<1x1x9x8x128xf32, #tpu.memory_space<vmem>>, vector<1x1x1x8x128xf32>
    %50 = vector.shape_cast %49 : vector<1x1x1x8x128xf32> to vector<8x128xf32>
    %51 = arith.addf %50, %45 : vector<8x128xf32>
    %c0_23 = arith.constant 0 : index
    %c0_24 = arith.constant 0 : index
    %c0_25 = arith.constant 0 : index
    %c0_26 = arith.constant 0 : index
    %c0_27 = arith.constant 0 : index
    %52 = vector.load %arg5[%c0_23, %c0_24, %c0_25, %c0_26, %c0_27] : memref<1x1x9x8x128xf32, #tpu.memory_space<vmem>>, vector<1x1x1x8x128xf32>
    %53 = vector.shape_cast %52 : vector<1x1x1x8x128xf32> to vector<8x128xf32>
    %54 = vector.shape_cast %51 : vector<8x128xf32> to vector<1x1x1x8x128xf32>
    tpu.vector_store %arg5[%c0_23, %c0_24, %c0_25, %c0_26, %c0_27], %54 {strides = array<i32>} : memref<1x1x9x8x128xf32, #tpu.memory_space<vmem>>, vector<1x1x1x8x128xf32>,
    %c0_28 = arith.constant 0 : index
    %c0_29 = arith.constant 0 : index
    %c1_30 = arith.constant 1 : index
    %c0_31 = arith.constant 0 : index
    %c0_32 = arith.constant 0 : index
    %55 = vector.load %arg5[%c0_28, %c0_29, %c1_30, %c0_31, %c0_32] : memref<1x1x9x8x128xf32, #tpu.memory_space<vmem>>, vector<1x1x1x8x128xf32>
    %56 = vector.shape_cast %55 : vector<1x1x1x8x128xf32> to vector<8x128xf32>
    %57 = arith.addf %56, %43 : vector<8x128xf32>
    %c0_33 = arith.constant 0 : index
    %c0_34 = arith.constant 0 : index
    %c1_35 = arith.constant 1 : index
    %c0_36 = arith.constant 0 : index
    %c0_37 = arith.constant 0 : index
    %58 = vector.load %arg5[%c0_33, %c0_34, %c1_35, %c0_36, %c0_37] : memref<1x1x9x8x128xf32, #tpu.memory_space<vmem>>, vector<1x1x1x8x128xf32>
    %59 = vector.shape_cast %58 : vector<1x1x1x8x128xf32> to vector<8x128xf32>
    %60 = vector.shape_cast %57 : vector<8x128xf32> to vector<1x1x1x8x128xf32>
    tpu.vector_store %arg5[%c0_33, %c0_34, %c1_35, %c0_36, %c0_37], %60 {strides = array<i32>} : memref<1x1x9x8x128xf32, #tpu.memory_space<vmem>>, vector<1x1x1x8x128xf32>,
    %c0_38 = arith.constant 0 : index
    %c0_39 = arith.constant 0 : index
    %c2_40 = arith.constant 2 : index
    %c0_41 = arith.constant 0 : index
    %c0_42 = arith.constant 0 : index
    %61 = vector.load %arg5[%c0_38, %c0_39, %c2_40, %c0_41, %c0_42] : memref<1x1x9x8x128xf32, #tpu.memory_space<vmem>>, vector<1x1x1x8x128xf32>
    %62 = vector.shape_cast %61 : vector<1x1x1x8x128xf32> to vector<8x128xf32>
    %63 = arith.addf %62, %48 : vector<8x128xf32>
    %c0_43 = arith.constant 0 : index
    %c0_44 = arith.constant 0 : index
    %c2_45 = arith.constant 2 : index
    %c0_46 = arith.constant 0 : index
    %c0_47 = arith.constant 0 : index
    %64 = vector.load %arg5[%c0_43, %c0_44, %c2_45, %c0_46, %c0_47] : memref<1x1x9x8x128xf32, #tpu.memory_space<vmem>>, vector<1x1x1x8x128xf32>
    %65 = vector.shape_cast %64 : vector<1x1x1x8x128xf32> to vector<8x128xf32>
    %66 = vector.shape_cast %63 : vector<8x128xf32> to vector<1x1x1x8x128xf32>
    tpu.vector_store %arg5[%c0_43, %c0_44, %c2_45, %c0_46, %c0_47], %66 {strides = array<i32>} : memref<1x1x9x8x128xf32, #tpu.memory_space<vmem>>, vector<1x1x1x8x128xf32>,
    %67 = arith.mulf %16, %25 : vector<8x128xf32>
    %c1_i32_48 = arith.constant 1 : i32
    %68 = vector.broadcast %c1_i32_48 : i32 to vector<8x128xi32>
    %69 = arith.cmpi eq, %4, %68 : vector<8x128xi32>
    %70 = arith.andi %69, %37 : vector<8x128xi1>
    %cst_49 = arith.constant 0.000000e+00 : f32
    %71 = vector.broadcast %cst_49 : f32 to vector<8x128xf32>
    %72 = arith.select %37, %67, %71 : vector<8x128xi1>, vector<8x128xf32>
    %cst_50 = arith.constant 0.000000e+00 : f32
    %73 = vector.broadcast %cst_50 : f32 to vector<8x128xf32>
    %74 = arith.select %70, %67, %73 : vector<8x128xi1>, vector<8x128xf32>
    %cst_51 = arith.constant 1.000000e+00 : f32
    %cst_52 = arith.constant 0.000000e+00 : f32
    %75 = vector.broadcast %cst_51 : f32 to vector<8x128xf32>
    %76 = vector.broadcast %cst_52 : f32 to vector<8x128xf32>
    %77 = arith.select %70, %75, %76 : vector<8x128xi1>, vector<8x128xf32>
    %c0_53 = arith.constant 0 : index
    %c0_54 = arith.constant 0 : index
    %c3 = arith.constant 3 : index
    %c0_55 = arith.constant 0 : index
    %c0_56 = arith.constant 0 : index
    %78 = vector.load %arg5[%c0_53, %c0_54, %c3, %c0_55, %c0_56] : memref<1x1x9x8x128xf32, #tpu.memory_space<vmem>>, vector<1x1x1x8x128xf32>
    %79 = vector.shape_cast %78 : vector<1x1x1x8x128xf32> to vector<8x128xf32>
    %80 = arith.addf %79, %74 : vector<8x128xf32>
    %c0_57 = arith.constant 0 : index
    %c0_58 = arith.constant 0 : index
    %c3_59 = arith.constant 3 : index
    %c0_60 = arith.constant 0 : index
    %c0_61 = arith.constant 0 : index
    %81 = vector.load %arg5[%c0_57, %c0_58, %c3_59, %c0_60, %c0_61] : memref<1x1x9x8x128xf32, #tpu.memory_space<vmem>>, vector<1x1x1x8x128xf32>
    %82 = vector.shape_cast %81 : vector<1x1x1x8x128xf32> to vector<8x128xf32>
    %83 = vector.shape_cast %80 : vector<8x128xf32> to vector<1x1x1x8x128xf32>
    tpu.vector_store %arg5[%c0_57, %c0_58, %c3_59, %c0_60, %c0_61], %83 {strides = array<i32>} : memref<1x1x9x8x128xf32, #tpu.memory_space<vmem>>, vector<1x1x1x8x128xf32>,
    %c0_62 = arith.constant 0 : index
    %c0_63 = arith.constant 0 : index
    %c4 = arith.constant 4 : index
    %c0_64 = arith.constant 0 : index
    %c0_65 = arith.constant 0 : index
    %84 = vector.load %arg5[%c0_62, %c0_63, %c4, %c0_64, %c0_65] : memref<1x1x9x8x128xf32, #tpu.memory_space<vmem>>, vector<1x1x1x8x128xf32>
    %85 = vector.shape_cast %84 : vector<1x1x1x8x128xf32> to vector<8x128xf32>
    %86 = arith.addf %85, %72 : vector<8x128xf32>
    %c0_66 = arith.constant 0 : index
    %c0_67 = arith.constant 0 : index
    %c4_68 = arith.constant 4 : index
    %c0_69 = arith.constant 0 : index
    %c0_70 = arith.constant 0 : index
    %87 = vector.load %arg5[%c0_66, %c0_67, %c4_68, %c0_69, %c0_70] : memref<1x1x9x8x128xf32, #tpu.memory_space<vmem>>, vector<1x1x1x8x128xf32>
    %88 = vector.shape_cast %87 : vector<1x1x1x8x128xf32> to vector<8x128xf32>
    %89 = vector.shape_cast %86 : vector<8x128xf32> to vector<1x1x1x8x128xf32>
    tpu.vector_store %arg5[%c0_66, %c0_67, %c4_68, %c0_69, %c0_70], %89 {strides = array<i32>} : memref<1x1x9x8x128xf32, #tpu.memory_space<vmem>>, vector<1x1x1x8x128xf32>,
    %c0_71 = arith.constant 0 : index
    %c0_72 = arith.constant 0 : index
    %c5 = arith.constant 5 : index
    %c0_73 = arith.constant 0 : index
    %c0_74 = arith.constant 0 : index
    %90 = vector.load %arg5[%c0_71, %c0_72, %c5, %c0_73, %c0_74] : memref<1x1x9x8x128xf32, #tpu.memory_space<vmem>>, vector<1x1x1x8x128xf32>
    %91 = vector.shape_cast %90 : vector<1x1x1x8x128xf32> to vector<8x128xf32>
    %92 = arith.addf %91, %77 : vector<8x128xf32>
    %c0_75 = arith.constant 0 : index
    %c0_76 = arith.constant 0 : index
    %c5_77 = arith.constant 5 : index
    %c0_78 = arith.constant 0 : index
    %c0_79 = arith.constant 0 : index
    %93 = vector.load %arg5[%c0_75, %c0_76, %c5_77, %c0_78, %c0_79] : memref<1x1x9x8x128xf32, #tpu.memory_space<vmem>>, vector<1x1x1x8x128xf32>
    %94 = vector.shape_cast %93 : vector<1x1x1x8x128xf32> to vector<8x128xf32>
    %95 = vector.shape_cast %92 : vector<8x128xf32> to vector<1x1x1x8x128xf32>
    tpu.vector_store %arg5[%c0_75, %c0_76, %c5_77, %c0_78, %c0_79], %95 {strides = array<i32>} : memref<1x1x9x8x128xf32, #tpu.memory_space<vmem>>, vector<1x1x1x8x128xf32>,
    %96 = arith.mulf %18, %25 : vector<8x128xf32>
    %c2_i32 = arith.constant 2 : i32
    %97 = vector.broadcast %c2_i32 : i32 to vector<8x128xi32>
    %98 = arith.cmpi eq, %4, %97 : vector<8x128xi32>
    %99 = arith.andi %98, %37 : vector<8x128xi1>
    %cst_80 = arith.constant 0.000000e+00 : f32
    %100 = vector.broadcast %cst_80 : f32 to vector<8x128xf32>
    %101 = arith.select %37, %96, %100 : vector<8x128xi1>, vector<8x128xf32>
    %cst_81 = arith.constant 0.000000e+00 : f32
    %102 = vector.broadcast %cst_81 : f32 to vector<8x128xf32>
    %103 = arith.select %99, %96, %102 : vector<8x128xi1>, vector<8x128xf32>
    %cst_82 = arith.constant 1.000000e+00 : f32
    %cst_83 = arith.constant 0.000000e+00 : f32
    %104 = vector.broadcast %cst_82 : f32 to vector<8x128xf32>
    %105 = vector.broadcast %cst_83 : f32 to vector<8x128xf32>
    %106 = arith.select %99, %104, %105 : vector<8x128xi1>, vector<8x128xf32>
    %c0_84 = arith.constant 0 : index
    %c0_85 = arith.constant 0 : index
    %c6 = arith.constant 6 : index
    %c0_86 = arith.constant 0 : index
    %c0_87 = arith.constant 0 : index
    %107 = vector.load %arg5[%c0_84, %c0_85, %c6, %c0_86, %c0_87] : memref<1x1x9x8x128xf32, #tpu.memory_space<vmem>>, vector<1x1x1x8x128xf32>
    %108 = vector.shape_cast %107 : vector<1x1x1x8x128xf32> to vector<8x128xf32>
    %109 = arith.addf %108, %103 : vector<8x128xf32>
    %c0_88 = arith.constant 0 : index
    %c0_89 = arith.constant 0 : index
    %c6_90 = arith.constant 6 : index
    %c0_91 = arith.constant 0 : index
    %c0_92 = arith.constant 0 : index
    %110 = vector.load %arg5[%c0_88, %c0_89, %c6_90, %c0_91, %c0_92] : memref<1x1x9x8x128xf32, #tpu.memory_space<vmem>>, vector<1x1x1x8x128xf32>
    %111 = vector.shape_cast %110 : vector<1x1x1x8x128xf32> to vector<8x128xf32>
    %112 = vector.shape_cast %109 : vector<8x128xf32> to vector<1x1x1x8x128xf32>
    tpu.vector_store %arg5[%c0_88, %c0_89, %c6_90, %c0_91, %c0_92], %112 {strides = array<i32>} : memref<1x1x9x8x128xf32, #tpu.memory_space<vmem>>, vector<1x1x1x8x128xf32>,
    %c0_93 = arith.constant 0 : index
    %c0_94 = arith.constant 0 : index
    %c7 = arith.constant 7 : index
    %c0_95 = arith.constant 0 : index
    %c0_96 = arith.constant 0 : index
    %113 = vector.load %arg5[%c0_93, %c0_94, %c7, %c0_95, %c0_96] : memref<1x1x9x8x128xf32, #tpu.memory_space<vmem>>, vector<1x1x1x8x128xf32>
    %114 = vector.shape_cast %113 : vector<1x1x1x8x128xf32> to vector<8x128xf32>
    %115 = arith.addf %114, %101 : vector<8x128xf32>
    %c0_97 = arith.constant 0 : index
    %c0_98 = arith.constant 0 : index
    %c7_99 = arith.constant 7 : index
    %c0_100 = arith.constant 0 : index
    %c0_101 = arith.constant 0 : index
    %116 = vector.load %arg5[%c0_97, %c0_98, %c7_99, %c0_100, %c0_101] : memref<1x1x9x8x128xf32, #tpu.memory_space<vmem>>, vector<1x1x1x8x128xf32>
    %117 = vector.shape_cast %116 : vector<1x1x1x8x128xf32> to vector<8x128xf32>
    %118 = vector.shape_cast %115 : vector<8x128xf32> to vector<1x1x1x8x128xf32>
    tpu.vector_store %arg5[%c0_97, %c0_98, %c7_99, %c0_100, %c0_101], %118 {strides = array<i32>} : memref<1x1x9x8x128xf32, #tpu.memory_space<vmem>>, vector<1x1x1x8x128xf32>,
    %c0_102 = arith.constant 0 : index
    %c0_103 = arith.constant 0 : index
    %c8 = arith.constant 8 : index
    %c0_104 = arith.constant 0 : index
    %c0_105 = arith.constant 0 : index
    %119 = vector.load %arg5[%c0_102, %c0_103, %c8, %c0_104, %c0_105] : memref<1x1x9x8x128xf32, #tpu.memory_space<vmem>>, vector<1x1x1x8x128xf32>
    %120 = vector.shape_cast %119 : vector<1x1x1x8x128xf32> to vector<8x128xf32>
    %121 = arith.addf %120, %106 : vector<8x128xf32>
    %c0_106 = arith.constant 0 : index
    %c0_107 = arith.constant 0 : index
    %c8_108 = arith.constant 8 : index
    %c0_109 = arith.constant 0 : index
    %c0_110 = arith.constant 0 : index
    %122 = vector.load %arg5[%c0_106, %c0_107, %c8_108, %c0_109, %c0_110] : memref<1x1x9x8x128xf32, #tpu.memory_space<vmem>>, vector<1x1x1x8x128xf32>
    %123 = vector.shape_cast %122 : vector<1x1x1x8x128xf32> to vector<8x128xf32>
    %124 = vector.shape_cast %121 : vector<8x128xf32> to vector<1x1x1x8x128xf32>
    tpu.vector_store %arg5[%c0_106, %c0_107, %c8_108, %c0_109, %c0_110], %124 {strides = array<i32>} : memref<1x1x9x8x128xf32, #tpu.memory_space<vmem>>, vector<1x1x1x8x128xf32>,
    return
  }
  func.func @transform_0(%arg0: i32, %arg1: i32, %arg2: i32) -> (i32, i32, i32, i32) {
    %c1_i32 = arith.constant 1 : i32
    %0 = arith.muli %arg1, %c1_i32 : i32
    %1 = arith.addi %0, %arg2 : i32
    %c0_i32 = arith.constant 0 : i32
    %2 = arith.minsi %1, %c0_i32 : i32
    %c0_i32_0 = arith.constant 0 : i32
    %c0_i32_1 = arith.constant 0 : i32
    %c0_i32_2 = arith.constant 0 : i32
    return %arg0, %c0_i32_0, %2, %c0_i32_1 : i32, i32, i32, i32
  }
  func.func @transform_1(%arg0: i32, %arg1: i32, %arg2: i32) -> (i32, i32, i32) {
    %c1_i32 = arith.constant 1 : i32
    %0 = arith.muli %arg1, %c1_i32 : i32
    %1 = arith.addi %0, %arg2 : i32
    %c0_i32 = arith.constant 0 : i32
    %2 = arith.minsi %1, %c0_i32 : i32
    %c0_i32_0 = arith.constant 0 : i32
    %c0_i32_1 = arith.constant 0 : i32
    return %arg0, %2, %c0_i32_0 : i32, i32, i32
  }
  func.func @transform_2(%arg0: i32, %arg1: i32, %arg2: i32) -> (i32, i32, i32, i32, i32) {
    %c0_i32 = arith.constant 0 : i32
    %c0_i32_0 = arith.constant 0 : i32
    %c0_i32_1 = arith.constant 0 : i32
    %c0_i32_2 = arith.constant 0 : i32
    return %arg0, %arg1, %c0_i32, %c0_i32_0, %c0_i32_1 : i32, i32, i32, i32, i32
  }
}

</mosaic_0001>

<bundles_post_ra>
// kernel: dice_loss.1
= control target key start
LH: loop header
LB: loop body
LE: loop exit
PB: predicated region body
PF: predicated region fallthrough
CT: control target
= control target key end

     0   :  { %s739_s9 = smov 0   ;;  %s741_s10 = smov 0   ;;  %s849_s0 = inlined_call_operand.vmem [shape: f32[2,3,2,128], index: 0, kind: input, shape index: {}]   ;;  %s850_s1 = inlined_call_operand.vmem [shape: s32[2,2,128], index: 1, kind: input, shape index: {}]   ;;  %s851_s2 = inlined_call_operand.vmem [shape: f32[2,1,9,8,128], index: 2, kind: output, shape index: {}]  }
   0x1   :  { %s743_s11 = smov 0   ;;  %s745_s12 = smov 0  }
   0x2   :  { %s747_s13 = smov 0  }
   0x3 LB: > { %s31_s14 = sadd.s32 1, %s713_s12  ;;  %p53_p1 = scmp.ne.s32.totalorder %s705_s10, %s701_s9  ;;  %s717_s13 = sphi %s747_s13, %s12_s13   ;;  %s713_s12 = sphi %s745_s12, %s861_s12   ;;  %s709_s11 = sphi %s743_s11, %s860_s11   ;;  %s705_s10 = sphi %s741_s10, %s859_s10   ;;  %s701_s9 = sphi %s739_s9, %s858_s9  }
   0x4   : > { %p33_p0 = scmp.ge.s32.totalorder %s31_s14, 2  ;;  %p54_p2 = scmp.eq.s32.totalorder %s717_s13, 0 }
   0x5   : > { %s46_s16 = sadd.s32 1, %s705_s10  ;;  %p551_p5 = scmp.ge.s32.totalorder %s717_s13, 2 }
   0x6   : > { %s863_s14 = smov (%p33_p0, %s31_s14), 0  ;;  %p55_p3 = por %p54_p2, %p53_p1 }
   0x7   : > { %s41_s15 = ssub.s32 %s713_s12, %s863_s14  ;;  %141 = sbr.rel (%p551_p5) target bundleno = 26 (0x1a), region = 16 }
   0x8   : > { %p44_p4 = scmp.eq.s32.totalorder %s41_s15, 0 }
   0xa   : > { %s774_s17 = scalar_select %p44_p4, %s705_s10, %s46_s16  }
   0xc   : > { %144 = sbr.rel (!%p55_p3) target bundleno = 26 (0x1a), region = 20  ;;  %s146_s18 = sand.u32 (%p55_p3), 1, %s705_s10  }
   0xd   : > { %s579_s19 = smul.u32 (%p55_p3), 6, %s713_s12  ;;  %s719_s25 = smov (%p55_p3), 0  }
   0xe   : > { %s578_s20 = smul.u32 (%p55_p3), 24, %s146_s18 }
   0xf   : > { %s159_s23 = scalar_lea.vmem (%p55_p3), %s849_s0, %s579_s19  }
  0x10   : > { %s148_s24 = scalar_lea.vmem (%p55_p3), [#allocation2], %s578_s20  }
  0x11 LB: >> { %v178_v0 = vld [vmem:[%s159_s23] sm:$0x3]  ;;  %v180_v1 = vld [vmem:[%s159_s23 + $0x2] sm:$0x3]  ;;  %v182_v2 = vld [vmem:[%s159_s23 + $0x4] sm:$0x3]  ;;  %s721_s25 = sphi %s719_s25, %s172_s25  }
  0x12   : >> { %179 = vst [vmem:[%s148_s24] sm:$0x3] %v178_v0  ;;  %s172_s25 = sadd.s32 1, %s721_s25  }
  0x13   : >> { %181 = vst [vmem:[%s148_s24 + $0x8] sm:$0x3] %v180_v1  ;;  %p171_p6 = scmp.ge.s32.totalorder %s172_s25, 1 }
  0x14   : >> { %183 = vst [vmem:[%s148_s24 + $0x10] sm:$0x3] %v182_v2 }
  0x15   : > { %174 = sbr.rel (!%p171_p6) target bundleno = 17 (0x11), region = 114 }
  0x1a PF: > { %p555_p7 = scmp.ge.s32.totalorder %s717_s13, 1  ;;  %p241_p8 = scmp.lt.s32.totalorder %s717_s13, 3 }
  0x1c   : > { %p242_p9 = pnand %p555_p7, %p241_p8 }
  0x1d   : > { %p298_p10 = scmp.lt.s32.totalorder (!%p242_p9), %s709_s11, 1  ;;  %s248_s26 = sand.u32 (!%p242_p9), 1, %s701_s9  }
  0x1e   : > { %245 = sbr.rel (%p242_p9) target bundleno = 78 (0x4e), region = 58 }
  0x1f   : > { %s580_s27 = smul.u32 (!%p242_p9), 24, %s248_s26 }
  0x21   : > { %s250_s29 = scalar_lea.vmem (!%p242_p9), [#allocation2], %s580_s27 }
  0x23   : > { %v358_v3 = vlaneseq  ;;  %s865_s11 = smov (!%p298_p10, %s709_s11), 1  ;;  %v334_v6 = vld [vmem:[%s250_s29] sm:$0xff]  ;;  %v558_v7 = vld [vmem:[%s250_s29 + $0x8] sm:$0xff]  ;;  %v559_v8 = vld [vmem:[%s250_s29 + $0x10] sm:$0xff]  ;;  %v723_v18 = vmov 0.0  }
  0x24   : > { %s556_s28 = sshll.u32 %s865_s11, 1  ;;  %v339_v10 = vmax.f32 %v334_v6, %v558_v7  ;;  %s581_s5 = smul.u32 72, %s865_s11 }
  0x25   : > { %v359_v4 = vshrl.u32 %v358_v3, 7  ;;  %v363_v5 = vand.u32 127, %v358_v3  ;;  %s304_s4 = scalar_lea.vmem %s850_s1, %s556_s28 }
  0x26   : > { %v333_v11 = vld [vmem:[%s304_s4] sm:$0xff]  ;;  %v340_v13 = vmax.f32 %v339_v10, %v559_v8  ;;  %s798_s8 = scalar_lea.vmem %s851_s2, %s581_s5 }
  0x27   : > { %v364_v9 = vmul.u32 128, %v359_v4  ;;  %vm368_vm0 = vcmp.eq.s32.totalorder %v333_v11, 0  ;;  %vm385_vm1 = vcmp.eq.s32.totalorder %v333_v11, 1  ;;  %vm403_vm4 = vcmp.eq.s32.totalorder %v333_v11, 2 }
  0x28   : > { %v341_v14 = vsub.f32 %v334_v6, %v340_v13  ;;  %v344_v15 = vsub.f32 %v558_v7, %v340_v13  ;;  %v347_v16 = vsub.f32 %v559_v8, %v340_v13 }
  0x29   : > { %v365_v12 = vadd.s32 %v364_v9, %v363_v5 }
  0x2a   : > { %v342_v21 = vmul.f32 1.442695, %v341_v14  ;;  %v345_v22 = vmul.f32 1.442695, %v344_v15  ;;  %v348_v23 = vmul.f32 1.442695, %v347_v16 }
  0x2b   : > { %vm366_vm2 = vcmp.lt.s32.totalorder %v365_v12, 256 }
  0x2c   : > { %vm791_vm3 = vmand %vm368_vm0, %vm366_vm2  ;;  %655 = vpow2.f32 %v342_v21 }
  0x2d   : > { %v372_v19 = vsel %vm791_vm3, 1.0, %v723_v18  ;;  %vm803_vm5 = vmand %vm385_vm1, %vm366_vm2  ;;  %657 = vpow2.f32 %v345_v22 }
  0x2e   : > { %vm808_vm6 = vmand %vm403_vm4, %vm366_vm2  ;;  %v389_v25 = vsel %vm803_vm5, 1.0, %v723_v18  ;;  %563 = vst [vmem:[%s798_s8 + $0x10] sm:$0xff] %v372_v19  ;;  %659 = vpow2.f32 %v348_v23 }
  0x2f   : > { %v407_v26 = vsel %vm808_vm6, 1.0, %v723_v18  ;;  %569 = vst [vmem:[%s798_s8 + $0x28] sm:$0xff] %v389_v25 }
  0x30   : > { %575 = vst [vmem:[%s798_s8 + $0x40] sm:$0xff] %v407_v26 }
  0x32   : > { %v656_v27 = vpop.eup %655 }
  0x33   : > { %v658_v28 = vpop.eup %657 }
  0x34   : > { %v660_v29 = vpop.eup %659  ;;  %v350_v30 = vadd.f32 %v658_v28, %v656_v27 }
  0x36   : > { %v351_v31 = vadd.f32 %v660_v29, %v350_v30 }
  0x38   : > { %661 = vrcp.f32 %v351_v31 }
  0x3e   : > { %v662_v32 = vpop.eup %661 }
  0x3f   : > { %v353_v33 = vmul.f32 %v662_v32, %v351_v31 }
  0x41   : > { %v354_v34 = vsub.f32 2.0, %v353_v33 }
  0x43   : > { %v355_v35 = vmul.f32 %v662_v32, %v354_v34 }
  0x45   : > { %v367_v36 = vmul.f32 %v656_v27, %v355_v35  ;;  %v384_v37 = vmul.f32 %v658_v28, %v355_v35  ;;  %v402_v38 = vmul.f32 %v660_v29, %v355_v35 }
  0x47   : > { %v371_v39 = vsel %vm791_vm3, %v367_v36, 0.0  ;;  %v370_v40 = vsel %vm366_vm2, %v367_v36, 0.0  ;;  %v388_v41 = vsel %vm803_vm5, %v384_v37, 0.0  ;;  %v387_v42 = vsel %vm366_vm2, %v384_v37, 0.0 }
  0x48   : > { %v406_v43 = vsel %vm808_vm6, %v402_v38, 0.0  ;;  %v405_v44 = vsel %vm366_vm2, %v402_v38, 0.0  ;;  %375 = vst [vmem:[%s798_s8] sm:$0xff] %v371_v39 }
  0x49   : > { %561 = vst [vmem:[%s798_s8 + $0x8] sm:$0xff] %v370_v40 }
  0x4a   : > { %565 = vst [vmem:[%s798_s8 + $0x18] sm:$0xff] %v388_v41 }
  0x4b   : > { %567 = vst [vmem:[%s798_s8 + $0x20] sm:$0xff] %v387_v42 }
  0x4c   : > { %571 = vst [vmem:[%s798_s8 + $0x30] sm:$0xff] %v406_v43 }
  0x4d   : > { %573 = vst [vmem:[%s798_s8 + $0x38] sm:$0xff] %v405_v44 }
  0x4e PF: > { %s12_s13 = sadd.s32 1, %s717_s13   ;;  %s858_s9 = smov %s705_s10 }
  0x4f   : > { %p9_p11 = scmp.ge.s32.totalorder %s12_s13, 4   ;;  %s859_s10 = smov %s774_s17 }
  0x50   : > { %s860_s11 = smov %s713_s12  ;;  %s861_s12 = smov %s863_s14 }
  0x51   :  { %11 = sbr.rel (!%p9_p11) target bundleno = 3 (0x3), region = 125 }

</bundles_post_ra>
